<compile_context>
chip_gen: v5e
topology: v5e:2x2
jax: 0.10.0
libtpu: 0.0.40
codegen_flags: <defaults>
</compile_context>

<pallas_src>
import functools

import jax
import jax.numpy as jnp
from jax.experimental import pallas as pl
from jax.experimental.pallas import tpu as pltpu

_VMEM_LIMIT_BYTES = 32 * 1024 * 1024   # explicit scoped-VMEM limit
_ROW_TILE = 512                        # row tile for the gridded projection kernels


def _vmem_spec():
    return pl.BlockSpec(memory_space=pltpu.MemorySpace.VMEM)


def _round_up(x, m):
    return (x + m - 1) // m * m


# ---------------------------------------------------------------------------
# Kernel A: fused highway stack + LSTM layer-0 input projection (row gridded)
#   x_ref    : (TILE, E)
#   hw_w_ref : (L, E, 3E)   [Wg | Wn | Wl] per layer
#   hw_b_ref : (L, 1, 3E)
#   wih_ref  : (E, 8H)      direction/gate interleaved columns (see Kernel C)
#   b_ref    : (1, 8H)
#   gx_ref   : (TILE, 8H)   = highway(x) @ wih + b
# ---------------------------------------------------------------------------
def highway_proj_kernel(x_ref, hw_w_ref, hw_b_ref, wih_ref, b_ref, gx_ref, *,
                        n_layers, n_embed):
    E = n_embed
    x = x_ref[...]
    for l in range(n_layers):                         # L is small -> static unroll
        z = jnp.dot(x, hw_w_ref[l], preferred_element_type=jnp.float32) + hw_b_ref[l]
        gate = jax.nn.sigmoid(z[:, 0:E])
        non_linear = jnp.maximum(z[:, E:2 * E], 0.0)
        linear = z[:, 2 * E:3 * E]
        x = gate * non_linear + (1.0 - gate) * linear
    gx_ref[...] = (jnp.dot(x, wih_ref[...], preferred_element_type=jnp.float32)
                   + b_ref[...])


def highway_proj(x_flat, hw_w, hw_b, wih, b):
    n, e = x_flat.shape
    out_w = wih.shape[1]
    tile_n = min(_ROW_TILE, n)
    kernel = functools.partial(highway_proj_kernel,
                               n_layers=int(hw_w.shape[0]), n_embed=e)
    return pl.pallas_call(
        kernel,
        out_shape=jax.ShapeDtypeStruct((n, out_w), jnp.float32),
        grid=(pl.cdiv(n, tile_n),),
        in_specs=[
            pl.BlockSpec((tile_n, e), lambda i: (i, 0)),
            pl.BlockSpec(hw_w.shape, lambda i: (0, 0, 0)),
            pl.BlockSpec(hw_b.shape, lambda i: (0, 0, 0)),
            pl.BlockSpec(wih.shape, lambda i: (0, 0)),
            pl.BlockSpec(b.shape, lambda i: (0, 0)),
        ],
        out_specs=pl.BlockSpec((tile_n, out_w), lambda i: (i, 0)),
        compiler_params=pltpu.CompilerParams(
            dimension_semantics=("parallel",),
            vmem_limit_bytes=_VMEM_LIMIT_BYTES),
    )(x_flat, hw_w, hw_b, wih, b)


# ---------------------------------------------------------------------------
# Kernel B: input projection for LSTM layers > 0 (row gridded)
# ---------------------------------------------------------------------------
def input_proj_kernel(x_ref, wih_ref, b_ref, gx_ref):
    gx_ref[...] = (jnp.dot(x_ref[...], wih_ref[...],
                           preferred_element_type=jnp.float32) + b_ref[...])


def input_proj(x_flat, wih, b):
    n, in_dim = x_flat.shape
    out_w = wih.shape[1]
    tile_n = min(_ROW_TILE, n)
    return pl.pallas_call(
        input_proj_kernel,
        out_shape=jax.ShapeDtypeStruct((n, out_w), jnp.float32),
        grid=(pl.cdiv(n, tile_n),),
        in_specs=[pl.BlockSpec((tile_n, in_dim), lambda i: (i, 0)),
                  pl.BlockSpec(wih.shape, lambda i: (0, 0)),
                  pl.BlockSpec(b.shape, lambda i: (0, 0))],
        out_specs=pl.BlockSpec((tile_n, out_w), lambda i: (i, 0)),
        compiler_params=pltpu.CompilerParams(
            dimension_semantics=("parallel",),
            vmem_limit_bytes=_VMEM_LIMIT_BYTES),
    )(x_flat, wih, b)


# ---------------------------------------------------------------------------
# Kernel C: bidirectional LSTM recurrence, both directions fused per step.
# Gate-column layout of gx / W_hh_blk (8H wide, H-wide blocks):
#   [ i_f | i_b | f_f | f_b | g_f | g_b | o_f | o_b ]
# With the state laid out as h_fb = [h_f | h_b] (B_pad, 2H):
#   h_fb @ W_hh_blk gives both directions' recurrent contribution in ONE MXU
#   matmul, and every gate (i/f/g/o) is a contiguous (B_pad, 2H) slice.
# Forward gate columns at step t come from gx rows of time t, backward gate
# columns from gx rows of time T-1-t -> one vector select per step.
# ---------------------------------------------------------------------------
def bilstm_rec_kernel(gx_ref, whh_ref, hseq_ref, hfin_ref, *,
                      seq_len, b_pad, hidden):
    T, Bp, H = seq_len, b_pad, hidden
    whh = whh_ref[...]                                  # (2H, 8H), loop invariant

    lane = jax.lax.broadcasted_iota(jnp.int32, (Bp, 8 * H), 1)
    fwd_cols = (lane // H) % 2 == 0                     # even H-blocks = forward cols

    def step(t, carry):
        h_fb, c_fb = carry
        off_f = pl.multiple_of(t * Bp, 8)               # aligned sublane offsets
        off_b = pl.multiple_of((T - 1 - t) * Bp, 8)
        gx_f = gx_ref[pl.ds(off_f, Bp), :]              # rows for time t
        gx_b = gx_ref[pl.ds(off_b, Bp), :]              # rows for time T-1-t
        gates = (jnp.where(fwd_cols, gx_f, gx_b)
                 + jnp.dot(h_fb, whh, preferred_element_type=jnp.float32))
        i_fb = jax.nn.sigmoid(gates[:, 0 * H:2 * H])
        f_fb = jax.nn.sigmoid(gates[:, 2 * H:4 * H])
        g_fb = jnp.tanh(gates[:, 4 * H:6 * H])
        o_fb = jax.nn.sigmoid(gates[:, 6 * H:8 * H])
        c_fb = f_fb * c_fb + i_fb * g_fb
        h_fb = o_fb * jnp.tanh(c_fb)
        # Direct stores: fwd half at time t, bwd half at time T-1-t (in-kernel
        # reversal).  No hidden-sequence scratch, no epilogue concat.
        hseq_ref[pl.ds(off_f, Bp), pl.ds(0, H)] = h_fb[:, 0:H]
        hseq_ref[pl.ds(off_b, Bp), pl.ds(H, H)] = h_fb[:, H:2 * H]
        return h_fb, c_fb

    h0 = jnp.zeros((Bp, 2 * H), jnp.float32)
    c0 = jnp.zeros((Bp, 2 * H), jnp.float32)
    unroll = max(u for u in (8, 4, 2, 1) if T % u == 0)
    h_fb, _ = jax.lax.fori_loop(0, T, step, (h0, c0), unroll=unroll)
    hfin_ref[...] = h_fb                                # final hiddens [fwd | bwd]


def bilstm_recurrence(gx, whh_blk, *, seq_len, b_pad, hidden):
    n = gx.shape[0]
    kernel = functools.partial(bilstm_rec_kernel, seq_len=seq_len,
                               b_pad=b_pad, hidden=hidden)
    # NOTE: gx is whole-VMEM resident here (fine at demo sizes).  At realistic
    # T*B this kernel would stream gx per time-chunk instead.
    return pl.pallas_call(
        kernel,
        out_shape=(jax.ShapeDtypeStruct((n, 2 * hidden), jnp.float32),
                   jax.ShapeDtypeStruct((b_pad, 2 * hidden), jnp.float32)),
        in_specs=[_vmem_spec(), _vmem_spec()],
        out_specs=(_vmem_spec(), _vmem_spec()),
        compiler_params=pltpu.CompilerParams(
            vmem_limit_bytes=_VMEM_LIMIT_BYTES),
    )(gx, whh_blk)


# ---------------------------------------------------------------------------
# Kernel-layout parameter packing (from standard per-direction params)
# ---------------------------------------------------------------------------
def _interleave_gate_cols(wf, wb, h):
    """[i,f,g,o]_fwd + [i,f,g,o]_bwd -> [i_f,i_b,f_f,f_b,g_f,g_b,o_f,o_b]."""
    parts = []
    for g in range(4):
        parts.append(wf[..., g * h:(g + 1) * h])
        parts.append(wb[..., g * h:(g + 1) * h])
    return jnp.concatenate(parts, axis=-1)


def _lstm_kernel_params(layer, h):
    wih = _interleave_gate_cols(layer["w_ih_f"], layer["w_ih_b"], h)    # (In, 8H)
    b = _interleave_gate_cols(layer["b_f"], layer["b_b"], h)            # (1, 8H)
    zeros = jnp.zeros_like(layer["w_hh_f"])
    whh_blk = jnp.concatenate([
        _interleave_gate_cols(layer["w_hh_f"], zeros, h),   # rows 0:H   <- h_f
        _interleave_gate_cols(zeros, layer["w_hh_b"], h),   # rows H:2H  <- h_b
    ], axis=0)                                              # (2H, 8H)
    return wih, b, whh_blk


# ---------------------------------------------------------------------------
# Encoder forward (single transpose + batch pad at entry; all heavy work in
# the three kernels above)
# ---------------------------------------------------------------------------
def encoder_forward(x, params, opt):
    B, T_, E = x.shape
    H = opt["n_hidden_E"]
    L = opt["n_layers_E"]
    Bp = _round_up(B, 8)                      # pad batch to a full sublane group

    xp = jnp.pad(x, ((0, Bp - B), (0, 0), (0, 0)))
    x_flat = jnp.transpose(xp, (1, 0, 2)).reshape(T_ * Bp, E)   # time-major rows

    # layer 0: highway stack + input projection fused in one row-gridded kernel
    wih0, b0, whh0 = _lstm_kernel_params(params["lstm"][0], H)
    gx = highway_proj(x_flat, params["hw_w"], params["hw_b"], wih0, b0)
    hseq, hfin = bilstm_recurrence(gx, whh0, seq_len=T_, b_pad=Bp, hidden=H)

    for l in range(1, L):
        wih, b, whh = _lstm_kernel_params(params["lstm"][l], H)
        gx = input_proj(hseq, wih, b)
        hseq, hfin = bilstm_recurrence(gx, whh, seq_len=T_, b_pad=Bp, hidden=H)

    # == torch: hidden.view(L, 2, B, H)[-1]; cat(list(.), dim=1) -> (B, 2H)
    return hfin[:B]


# ---------------------------------------------------------------------------
# Pure-JAX reference (PyTorch semantics) on standard-layout parameters
# ---------------------------------------------------------------------------
def ref_encoder(x, params, opt):
    B, T_, E = x.shape
    H = opt["n_hidden_E"]

    x2d = x.reshape(B * T_, E)
    for l in range(params["hw_w"].shape[0]):
        w = params["hw_w"][l]
        b = params["hw_b"][l]
        gate = jax.nn.sigmoid(x2d @ w[:, 0:E] + b[:, 0:E])
        nl = jnp.maximum(x2d @ w[:, E:2 * E] + b[:, E:2 * E], 0.0)
        lin = x2d @ w[:, 2 * E:3 * E] + b[:, 2 * E:3 * E]
        x2d = gate * nl + (1.0 - gate) * lin
    inp = jnp.transpose(x2d.reshape(B, T_, E), (1, 0, 2))          # (T, B, In)

    def run_dir(seq, w_ih, w_hh, bias):
        h = jnp.zeros((B, H), jnp.float32)
        c = jnp.zeros((B, H), jnp.float32)
        hs = []
        for t in range(seq.shape[0]):
            g = seq[t] @ w_ih + h @ w_hh + bias
            i_g = jax.nn.sigmoid(g[:, 0:H])
            f_g = jax.nn.sigmoid(g[:, H:2 * H])
            g_g = jnp.tanh(g[:, 2 * H:3 * H])
            o_g = jax.nn.sigmoid(g[:, 3 * H:4 * H])
            c = f_g * c + i_g * g_g
            h = o_g * jnp.tanh(c)
            hs.append(h)
        return jnp.stack(hs, 0), h

    hf = hb = None
    for l in range(opt["n_layers_E"]):
        p = params["lstm"][l]
        seq_f, hf = run_dir(inp, p["w_ih_f"], p["w_hh_f"], p["b_f"])
        seq_b_rev, hb = run_dir(jnp.flip(inp, 0), p["w_ih_b"], p["w_hh_b"], p["b_b"])
        inp = jnp.concatenate([seq_f, jnp.flip(seq_b_rev, 0)], axis=-1)
    return jnp.concatenate([hf, hb], axis=1)


# ---------------------------------------------------------------------------
# Deterministic parameter init (PyTorch-style uniform ranges; synthetic)
# ---------------------------------------------------------------------------
def init_params(key, opt):
    E, H, L = opt["n_embed"], opt["n_hidden_E"], opt["n_layers_E"]

    def u(k, shape, bound):
        return jax.random.uniform(k, shape, jnp.float32, -bound, bound)

    hw_w, hw_b = [], []
    for _ in range(opt["n_highway_layers"]):
        key, k1, k2 = jax.random.split(key, 3)
        bnd = 1.0 / float(E) ** 0.5
        hw_w.append(u(k1, (E, 3 * E), bnd))           # [Wg | Wn | Wl] (in, out)
        hw_b.append(u(k2, (1, 3 * E), bnd))           # [bg | bn | bl]
    params = {"hw_w": jnp.stack(hw_w, 0), "hw_b": jnp.stack(hw_b, 0), "lstm": []}

    for l in range(L):
        in_sz = E if l == 0 else 2 * H
        bnd = 1.0 / float(H) ** 0.5
        key, *ks = jax.random.split(key, 9)
        params["lstm"].append({
            "w_ih_f": u(ks[0], (in_sz, 4 * H), bnd),  # gate order i,f,g,o (=W_ih.T)
            "w_ih_b": u(ks[1], (in_sz, 4 * H), bnd),
            "w_hh_f": u(ks[2], (H, 4 * H), bnd),
            "w_hh_b": u(ks[3], (H, 4 * H), bnd),
            "b_f": u(ks[4], (1, 4 * H), bnd) + u(ks[5], (1, 4 * H), bnd),  # b_ih+b_hh
            "b_b": u(ks[6], (1, 4 * H), bnd) + u(ks[7], (1, 4 * H), bnd),
        })
    return params


if __name__ == "__main__":
    base_opt = dict(n_embed=32, n_hidden_E=32, n_highway_layers=2)
    B, T_ = 2, 8
    key = jax.random.PRNGKey(0)

    for n_layers in (1, 2):                            # also exercise the multi-layer path
        opt = dict(base_opt, n_layers_E=n_layers)
        k_param, k_x = jax.random.split(jax.random.fold_in(key, n_layers))
        params = init_params(k_param, opt)
        x = jax.random.normal(k_x, (B, T_, opt["n_embed"]), dtype=jnp.float32)

        out = jax.block_until_ready(encoder_forward(x, params, opt))
        assert out.shape == (B, 2 * opt["n_hidden_E"]), out.shape

        ref = ref_encoder(x, params, opt)
        err = float(jnp.max(jnp.abs(out - ref)))
        assert jnp.allclose(out, ref, atol=5e-4, rtol=5e-4), err

    print("KERNEL_OK")
</pallas_src>

<mosaic_0001>
module attributes {stable_mosaic.version = 11 : i64} {
  func.func @highway_proj_kernel(%arg0: i32, %arg1: memref<64x32xf32, #tpu.memory_space<vmem>>, %arg2: memref<2x32x96xf32, #tpu.memory_space<vmem>>, %arg3: memref<2x1x96xf32, #tpu.memory_space<vmem>>, %arg4: memref<32x256xf32, #tpu.memory_space<vmem>>, %arg5: memref<1x256xf32, #tpu.memory_space<vmem>>, %arg6: memref<64x256xf32, #tpu.memory_space<vmem>>) attributes {dimension_semantics = [#tpu.dimension_semantics<parallel>], iteration_bounds = array<i64: 1>, scalar_prefetch = 0 : i64, scratch_operands = 0 : i64, tpu.core_type = #tpu.core_type<tc>, window_params = [{transform_indices = @transform_0, window_bounds = array<i64: 64, 32>}, {pipeline_mode = #tpu.pipeline_mode<synchronous>, transform_indices = @transform_1, window_bounds = array<i64: 2, 32, 96>}, {pipeline_mode = #tpu.pipeline_mode<synchronous>, transform_indices = @transform_2, window_bounds = array<i64: 2, 1, 96>}, {pipeline_mode = #tpu.pipeline_mode<synchronous>, transform_indices = @transform_3, window_bounds = array<i64: 32, 256>}, {pipeline_mode = #tpu.pipeline_mode<synchronous>, transform_indices = @transform_4, window_bounds = array<i64: 1, 256>}, {transform_indices = @transform_5, window_bounds = array<i64: 64, 256>}]} {
    %c0 = arith.constant 0 : index
    %c0_0 = arith.constant 0 : index
    %0 = vector.load %arg1[%c0, %c0_0] : memref<64x32xf32, #tpu.memory_space<vmem>>, vector<64x32xf32>
    %c0_1 = arith.constant 0 : index
    %c0_2 = arith.constant 0 : index
    %c0_3 = arith.constant 0 : index
    %1 = vector.load %arg2[%c0_1, %c0_2, %c0_3] : memref<2x32x96xf32, #tpu.memory_space<vmem>>, vector<1x32x96xf32>
    %2 = vector.shape_cast %1 : vector<1x32x96xf32> to vector<32x96xf32>
    %cst = arith.constant dense<0.000000e+00> : vector<64x96xf32>
    %3 = tpu.matmul %0, %2, %cst {dimension_numbers = #tpu.dot_dimension_numbers<[1], [0], [0], [1], [0, 0, 1, 1], [], []>} : vector<64x32xf32>, vector<32x96xf32>, vector<64x96xf32> -> vector<64x96xf32>
    %c0_4 = arith.constant 0 : index
    %c0_5 = arith.constant 0 : index
    %c0_6 = arith.constant 0 : index
    %4 = vector.load %arg3[%c0_4, %c0_5, %c0_6] : memref<2x1x96xf32, #tpu.memory_space<vmem>>, vector<1x1x96xf32>
    %5 = vector.shape_cast %4 : vector<1x1x96xf32> to vector<1x96xf32>
    %6 = vector.broadcast %5 : vector<1x96xf32> to vector<64x96xf32>
    %7 = arith.addf %3, %6 : vector<64x96xf32>
    %8 = vector.extract_strided_slice %7 {offsets = [0, 0], sizes = [64, 32], strides = [1, 1]} : vector<64x96xf32> to vector<64x32xf32>
    %9 = arith.negf %8 : vector<64x32xf32>
    %10 = math.exp %9 : vector<64x32xf32>
    %cst_7 = arith.constant 1.000000e+00 : f32
    %11 = vector.broadcast %cst_7 : f32 to vector<64x32xf32>
    %12 = arith.addf %11, %10 : vector<64x32xf32>
    %13 = arith.divf %11, %12 : vector<64x32xf32>
    %14 = vector.extract_strided_slice %7 {offsets = [0, 32], sizes = [64, 32], strides = [1, 1]} : vector<64x96xf32> to vector<64x32xf32>
    %cst_8 = arith.constant 0.000000e+00 : f32
    %15 = vector.broadcast %cst_8 : f32 to vector<64x32xf32>
    %16 = arith.maximumf %14, %15 : vector<64x32xf32>
    %17 = vector.extract_strided_slice %7 {offsets = [0, 64], sizes = [64, 32], strides = [1, 1]} : vector<64x96xf32> to vector<64x32xf32>
    %18 = arith.mulf %13, %16 : vector<64x32xf32>
    %cst_9 = arith.constant 1.000000e+00 : f32
    %19 = vector.broadcast %cst_9 : f32 to vector<64x32xf32>
    %20 = arith.subf %19, %13 : vector<64x32xf32>
    %21 = arith.mulf %20, %17 : vector<64x32xf32>
    %22 = arith.addf %18, %21 : vector<64x32xf32>
    %c1 = arith.constant 1 : index
    %c0_10 = arith.constant 0 : index
    %c0_11 = arith.constant 0 : index
    %23 = vector.load %arg2[%c1, %c0_10, %c0_11] : memref<2x32x96xf32, #tpu.memory_space<vmem>>, vector<1x32x96xf32>
    %24 = vector.shape_cast %23 : vector<1x32x96xf32> to vector<32x96xf32>
    %cst_12 = arith.constant dense<0.000000e+00> : vector<64x96xf32>
    %25 = tpu.matmul %22, %24, %cst_12 {dimension_numbers = #tpu.dot_dimension_numbers<[1], [0], [0], [1], [0, 0, 1, 1], [], []>} : vector<64x32xf32>, vector<32x96xf32>, vector<64x96xf32> -> vector<64x96xf32>
    %c1_13 = arith.constant 1 : index
    %c0_14 = arith.constant 0 : index
    %c0_15 = arith.constant 0 : index
    %26 = vector.load %arg3[%c1_13, %c0_14, %c0_15] : memref<2x1x96xf32, #tpu.memory_space<vmem>>, vector<1x1x96xf32>
    %27 = vector.shape_cast %26 : vector<1x1x96xf32> to vector<1x96xf32>
    %28 = vector.broadcast %27 : vector<1x96xf32> to vector<64x96xf32>
    %29 = arith.addf %25, %28 : vector<64x96xf32>
    %30 = vector.extract_strided_slice %29 {offsets = [0, 0], sizes = [64, 32], strides = [1, 1]} : vector<64x96xf32> to vector<64x32xf32>
    %31 = arith.negf %30 : vector<64x32xf32>
    %32 = math.exp %31 : vector<64x32xf32>
    %cst_16 = arith.constant 1.000000e+00 : f32
    %33 = vector.broadcast %cst_16 : f32 to vector<64x32xf32>
    %34 = arith.addf %33, %32 : vector<64x32xf32>
    %35 = arith.divf %33, %34 : vector<64x32xf32>
    %36 = vector.extract_strided_slice %29 {offsets = [0, 32], sizes = [64, 32], strides = [1, 1]} : vector<64x96xf32> to vector<64x32xf32>
    %cst_17 = arith.constant 0.000000e+00 : f32
    %37 = vector.broadcast %cst_17 : f32 to vector<64x32xf32>
    %38 = arith.maximumf %36, %37 : vector<64x32xf32>
    %39 = vector.extract_strided_slice %29 {offsets = [0, 64], sizes = [64, 32], strides = [1, 1]} : vector<64x96xf32> to vector<64x32xf32>
    %40 = arith.mulf %35, %38 : vector<64x32xf32>
    %cst_18 = arith.constant 1.000000e+00 : f32
    %41 = vector.broadcast %cst_18 : f32 to vector<64x32xf32>
    %42 = arith.subf %41, %35 : vector<64x32xf32>
    %43 = arith.mulf %42, %39 : vector<64x32xf32>
    %44 = arith.addf %40, %43 : vector<64x32xf32>
    %c0_19 = arith.constant 0 : index
    %c0_20 = arith.constant 0 : index
    %45 = vector.load %arg4[%c0_19, %c0_20] : memref<32x256xf32, #tpu.memory_space<vmem>>, vector<32x256xf32>
    %cst_21 = arith.constant dense<0.000000e+00> : vector<64x256xf32>
    %46 = tpu.matmul %44, %45, %cst_21 {dimension_numbers = #tpu.dot_dimension_numbers<[1], [0], [0], [1], [0, 0, 1, 1], [], []>} : vector<64x32xf32>, vector<32x256xf32>, vector<64x256xf32> -> vector<64x256xf32>
    %c0_22 = arith.constant 0 : index
    %c0_23 = arith.constant 0 : index
    %47 = vector.load %arg5[%c0_22, %c0_23] : memref<1x256xf32, #tpu.memory_space<vmem>>, vector<1x256xf32>
    %48 = vector.broadcast %47 : vector<1x256xf32> to vector<64x256xf32>
    %49 = arith.addf %46, %48 : vector<64x256xf32>
    %c0_24 = arith.constant 0 : index
    %c0_25 = arith.constant 0 : index
    %50 = vector.load %arg6[%c0_24, %c0_25] : memref<64x256xf32, #tpu.memory_space<vmem>>, vector<64x256xf32>
    tpu.vector_store %arg6[%c0_24, %c0_25], %49 {strides = array<i32>} : memref<64x256xf32, #tpu.memory_space<vmem>>, vector<64x256xf32>,
    return
  }
  func.func @transform_0(%arg0: i32) -> (i32, i32) {
    %c0_i32 = arith.constant 0 : i32
    %c0_i32_0 = arith.constant 0 : i32
    return %arg0, %c0_i32 : i32, i32
  }
  func.func @transform_1(%arg0: i32) -> (i32, i32, i32) {
    %c0_i32 = arith.constant 0 : i32
    %c0_i32_0 = arith.constant 0 : i32
    %c0_i32_1 = arith.constant 0 : i32
    %c0_i32_2 = arith.constant 0 : i32
    return %c0_i32, %c0_i32_0, %c0_i32_1 : i32, i32, i32
  }
  func.func @transform_2(%arg0: i32) -> (i32, i32, i32) {
    %c0_i32 = arith.constant 0 : i32
    %c0_i32_0 = arith.constant 0 : i32
    %c0_i32_1 = arith.constant 0 : i32
    %c0_i32_2 = arith.constant 0 : i32
    return %c0_i32, %c0_i32_0, %c0_i32_1 : i32, i32, i32
  }
  func.func @transform_3(%arg0: i32) -> (i32, i32) {
    %c0_i32 = arith.constant 0 : i32
    %c0_i32_0 = arith.constant 0 : i32
    %c0_i32_1 = arith.constant 0 : i32
    return %c0_i32, %c0_i32_0 : i32, i32
  }
  func.func @transform_4(%arg0: i32) -> (i32, i32) {
    %c0_i32 = arith.constant 0 : i32
    %c0_i32_0 = arith.constant 0 : i32
    %c0_i32_1 = arith.constant 0 : i32
    return %c0_i32, %c0_i32_0 : i32, i32
  }
  func.func @transform_5(%arg0: i32) -> (i32, i32) {
    %c0_i32 = arith.constant 0 : i32
    %c0_i32_0 = arith.constant 0 : i32
    return %arg0, %c0_i32 : i32, i32
  }
}

</mosaic_0001>

<bundles_post_ra>
// kernel: tpu_custom_call.1
= control target key start
LH: loop header
LB: loop body
LE: loop exit
PB: predicated region body
PF: predicated region fallthrough
CT: control target
= control target key end

     0   :  { %10 = vsyncpa [#allocation3], 0  ;;  %s1386_s0 = inlined_call_operand.vmem [shape: f32[64,32], index: 0, kind: input, shape index: {}]   ;;  %s1387_s1 = inlined_call_operand.vmem [shape: f32[2,32,96], index: 1, kind: input, shape index: {}]   ;;  %s1388_s2 = inlined_call_operand.vmem [shape: f32[2,1,96], index: 2, kind: input, shape index: {}]   ;;  %s1389_s3 = inlined_call_operand.hbm [shape: f32[32,256], index: 3, kind: input, shape index: {}]   ;;  %s1390_s4 = inlined_call_operand.vmem [shape: f32[1,256], index: 4, kind: input, shape index: {}]   ;;  %s1391_s5 = inlined_call_operand.hbm [shape: f32[64,256], index: 5, kind: output, shape index: {}]  }
   0x1   :  { %11 = vsyncpa [#allocation4], 0  ;;  %s22_s20 = sshll.u32 %s1389_s3, 4  ;;  %s1038_s21 = smov [#allocation2]   ;;  %s23_s20 = int_to_ptr.hbm [resolvable:$true] %s22_s20 }
   0x2   :  { %s24_s22 = sshll.u32 %s1038_s21, 4  ;;  %s1039_s23 = smov 256   ;;  %s25_s22 = int_to_ptr.vmem [resolvable:$true] %s24_s22 }
   0x3   :  { %s1040_s24 = smov 16  }
   0x4   :  { %30 = dma.hbm_to_vmem [thread:$0]  %s23_s20, 1024, %s25_s22, [#allocation3], %s1039_s23, %s1039_s23, %s1040_s24  }
   0x5   :  { %1034 = dma.done.wait [#allocation3], 1024  }
   0x6   :  { %1035 = vsyncadd [#allocation3], 4294966272  ;;  %v48_v0 = vld [vmem:[%s1387_s1 + $0x18] sm:$0xff]  ;;  %v47_v1 = vld [vmem:[%s1387_s1 + $0x10] sm:$0xff]  ;;  %vm53_vm0 = vcmask 261120   ;;  %s1041_s27 = smov 96  }
   0x7   :  { %90 = vmatpush.msra.mxu0 %v48_v0  ;;  %v46_v2 = vld [vmem:[%s1387_s1 + $0x8] sm:$0xff]  ;;  %v45_v3 = vld [vmem:[%s1387_s1] sm:$0xff]  ;;  %v39_v6 = vld [vmem:[%s1386_s0 + $0x10] sm:$0xff]  ;;  %s1042_s28 = smov 64   ;;  %s848_s15 = sshll.u32 %s1391_s5, 4  ;;  %s849_s15 = int_to_ptr.hbm [resolvable:$true] %s848_s15 }
   0x8   :  { %v37_v4 = vld [vmem:[%s1386_s0] sm:$0xff]  ;;  %v38_v5 = vld [vmem:[%s1386_s0 + $0x8] sm:$0xff]  ;;  %v40_v7 = vld [vmem:[%s1386_s0 + $0x18] sm:$0xff] }
   0x9   :  { %91 = vmatpush.msra.mxu0 %v47_v1  ;;  %v41_v8 = vld [vmem:[%s1386_s0 + $0x20] sm:$0xff]  ;;  %v42_v9 = vld [vmem:[%s1386_s0 + $0x28] sm:$0xff]  ;;  %v43_v10 = vld [vmem:[%s1386_s0 + $0x30] sm:$0xff] }
   0xa   :  { %v44_v11 = vld [vmem:[%s1386_s0 + $0x38] sm:$0xff]  ;;  %v920_v12 = vld [vmem:[%s1388_s2] ss:$0 sm:$0xff]  ;;  %v879_v41 = vld [vmem:[%s1387_s1 + $0x30] sm:$0xff] }
   0xb   :  { %92 = vmatpush.msra.mxu0 %v46_v2  ;;  %v880_v40 = vld [vmem:[%s1387_s1 + $0x38] sm:$0xff]  ;;  %v878_v45 = vld [vmem:[%s1387_s1 + $0x28] sm:$0xff]  ;;  %v877_v47 = vld [vmem:[%s1387_s1 + $0x20] sm:$0xff] }
   0xc   :  { %421 = vmatpush.msra.mxu1 %v880_v40 }
   0xd   :  { %93 = vmatpush.msra.mxu0 %v45_v3 }
   0xe   :  { %861 = vmatmul.msk.f32.vlgmr.msra.gmra.mxu0 %vm53_vm0, %v37_v4  ;;  %422 = vmatpush.msra.mxu1 %v879_v41 }
  0x10   :  { %423 = vmatpush.msra.mxu1 %v878_v45 }
  0x12   :  { %424 = vmatpush.msra.mxu1 %v877_v47 }
  0x16   :  { %862 = vmatmul.msk.f32.gmra.mxu0 %vm53_vm0, %v38_v5 }
  0x1e   :  { %863 = vmatmul.msk.f32.gmra.mxu0 %vm53_vm0, %v39_v6 }
  0x26   :  { %864 = vmatmul.msk.f32.gmra.mxu0 %vm53_vm0, %v40_v7 }
  0x2e   :  { %865 = vmatmul.msk.f32.gmra.mxu0 %vm53_vm0, %v41_v8 }
  0x36   :  { %866 = vmatmul.msk.f32.gmra.mxu0 %vm53_vm0, %v42_v9 }
  0x3e   :  { %867 = vmatmul.msk.f32.gmra.mxu0 %vm53_vm0, %v43_v10 }
  0x46   :  { %868 = vmatmul.msk.f32.gmra.mxu0 %vm53_vm0, %v44_v11 }
  0x8b   :  { %v95_v13 = vpop.f32.mrf.mxu0 }
  0x8c   :  { %v96_v14 = vadd.f32 %v920_v12, %v95_v13 }
  0x8e   :  { %v271_v15 = vmax.f32 %v96_v14, 0.0  ;;  %v869_v37 = vmul.f32 -1.442695, %v96_v14 }
  0x90   :  { %287 = vrot.lane.b32.xlu0 %v271_v15, %s1041_s27  ;;  %922 = vpow2.f32 %v869_v37 }
  0x93   :  { %v98_v16 = vpop.f32.mrf.mxu0 }
  0x94   :  { %v99_v17 = vadd.f32 %v920_v12, %v98_v16 }
  0x96   :  { %v272_v18 = vmax.f32 %v99_v17, 0.0  ;;  %v870_v38 = vmul.f32 -1.442695, %v99_v17  ;;  %v923_v39 = vpop.eup %922 }
  0x97   :  { %v143_v42 = vadd.f32 1.0, %v923_v39 }
  0x98   :  { %289 = vrot.lane.b32.xlu1 %v272_v18, %s1041_s27  ;;  %335 = vrot.lane.b32.xlu0 %v96_v14, %s1042_s28  ;;  %924 = vpow2.f32 %v870_v38 }
  0x99   :  { %926 = vrcp.f32 %v143_v42  ;;  %v162_v63 = vand.u32 2147483648, %v143_v42  ;;  %vm156_vm2 = vweird.f32 %v143_v42  ;;  %v160_v4 = vand.u32 2147483647, %v143_v42 }
  0x9b   :  { %v101_v19 = vpop.f32.mrf.mxu0  ;;  %v163_v8 = vor.u32 1.1754944e-38, %v162_v63  ;;  %vm161_vm4 = vcmp.eq.f32.partialorder %v160_v4, 8.507059e+37 }
  0x9c   :  { %v102_v20 = vadd.f32 %v920_v12, %v101_v19 }
  0x9e   :  { %v273_v21 = vmax.f32 %v102_v20, 0.0  ;;  %v871_v43 = vmul.f32 -1.442695, %v102_v20  ;;  %v925_v44 = vpop.eup %924 }
  0x9f   :  { %v1160_v46 = vadd.f32 1.0, %v925_v44  ;;  %v927_v49 = vpop.eup %926 }
  0xa0   :  { %291 = vrot.lane.b32.xlu2 %v273_v21, %s1041_s27  ;;  %337 = vrot.lane.b32.xlu1 %v99_v17, %s1042_s28  ;;  %928 = vpow2.f32 %v871_v43  ;;  %v152_v51 = vmul.f32 %v927_v49, %v143_v42  ;;  %vm157_vm1 = vweird.f32 %v927_v49 }
  0xa1   :  { %930 = vrcp.f32 %v1160_v46  ;;  %vm158_vm3 = vmor %vm156_vm2, %vm157_vm1  ;;  %v177_v14 = vand.u32 2147483648, %v1160_v46  ;;  %vm171_vm6 = vweird.f32 %v1160_v46  ;;  %v175_v15 = vand.u32 2147483647, %v1160_v46 }
  0xa2   :  { %v153_v55 = vsub.f32 1.0, %v152_v51 }
  0xa3   :  { %v104_v22 = vpop.f32.mrf.mxu0  ;;  %vm176_vm10 = vcmp.eq.f32.partialorder %v175_v15, 8.507059e+37 }
  0xa4   :  { %v105_v23 = vadd.f32 %v920_v12, %v104_v22  ;;  %v154_v58 = vmul.f32 %v927_v49, %v153_v55 }
  0xa6   :  { %v274_v24 = vmax.f32 %v105_v23, 0.0  ;;  %v872_v48 = vmul.f32 -1.442695, %v105_v23  ;;  %v929_v50 = vpop.eup %928  ;;  %v155_v62 = vadd.f32 %v927_v49, %v154_v58 }
  0xa7   :  { %v1166_v52 = vadd.f32 1.0, %v929_v50  ;;  %v931_v53 = vpop.eup %930 }
  0xa8   :  { %339 = vrot.lane.b32.xlu2 %v102_v20, %s1042_s28  ;;  %341 = vrot.lane.b32.xlu1 %v105_v23, %s1042_s28  ;;  %932 = vpow2.f32 %v872_v48  ;;  %v167_v57 = vmul.f32 %v931_v53, %v1160_v46  ;;  %v159_v6 = vsel %vm158_vm3, %v927_v49, %v155_v62  ;;  %vm172_vm5 = vweird.f32 %v931_v53 }
  0xa9   :  { %293 = vrot.lane.b32.xlu0 %v274_v24, %s1041_s27  ;;  %934 = vrcp.f32 %v1166_v52  ;;  %v164_v11 = vsel %vm161_vm4, %v163_v8, %v159_v6  ;;  %vm1187_vm7 = vmor %vm171_vm6, %vm172_vm5  ;;  %vm186_vm8 = vweird.f32 %v1166_v52  ;;  %v190_v37 = vand.u32 2147483647, %v1166_v52 }
  0xaa   :  { %v168_v61 = vsub.f32 1.0, %v167_v57  ;;  %v319_v19 = vsub.f32 1.0, %v164_v11 }
  0xab   :  { %v107_v25 = vpop.f32.mrf.mxu0  ;;  %vm191_vm12 = vcmp.eq.f32.partialorder %v190_v37, 8.507059e+37 }
  0xac   :  { %v108_v26 = vadd.f32 %v920_v12, %v107_v25  ;;  %v169_v5 = vmul.f32 %v931_v53, %v168_v61  ;;  %v178_v25 = vor.u32 1.1754944e-38, %v177_v14 }
  0xae   :  { %v275_v27 = vmax.f32 %v108_v26, 0.0  ;;  %v873_v54 = vmul.f32 -1.442695, %v108_v26  ;;  %v933_v56 = vpop.eup %932 }
  0xaf   :  { %v1170_v59 = vadd.f32 1.0, %v933_v56  ;;  %v1172_v60 = vpop.eup %934 }
  0xb0   :  { %295 = vrot.lane.b32.xlu2 %v275_v27, %s1041_s27  ;;  %936 = vpow2.f32 %v873_v54  ;;  %v182_v2 = vmul.f32 %v1172_v60, %v1166_v52  ;;  %vm187_vm9 = vweird.f32 %v1172_v60 }
  0xb1   :  { %343 = vrot.lane.b32.xlu0 %v108_v26, %s1042_s28  ;;  %938 = vrcp.f32 %v1170_v59  ;;  %vm188_vm11 = vmor %vm186_vm8, %vm187_vm9  ;;  %vm201_vm13 = vweird.f32 %v1170_v59  ;;  %v205_v54 = vand.u32 2147483647, %v1170_v59 }
  0xb2   :  { %v183_v9 = vsub.f32 1.0, %v182_v2 }
  0xb3   :  { %v110_v28 = vpop.f32.mrf.mxu0  ;;  %vm206_vm1 = vcmp.eq.f32.partialorder %v205_v54, 8.507059e+37 }
  0xb4   :  { %v111_v29 = vadd.f32 %v920_v12, %v110_v28  ;;  %v184_v16 = vmul.f32 %v1172_v60, %v183_v9 }
  0xb6   :  { %v276_v30 = vmax.f32 %v111_v29, 0.0  ;;  %v937_v0 = vpop.eup %936  ;;  %v874_v1 = vmul.f32 -1.442695, %v111_v29  ;;  %v185_v28 = vadd.f32 %v1172_v60, %v184_v16 }
  0xb7   :  { %v1177_v7 = vadd.f32 1.0, %v937_v0  ;;  %v1179_v10 = vpop.eup %938 }
  0xb8   :  { %345 = vrot.lane.b32.xlu2 %v111_v29, %s1042_s28  ;;  %297 = vrot.lane.b32.xlu1 %v276_v30, %s1041_s27  ;;  %940 = vpow2.f32 %v874_v1  ;;  %v197_v20 = vmul.f32 %v1179_v10, %v1170_v59  ;;  %v189_v40 = vsel %vm188_vm11, %v1172_v60, %v185_v28  ;;  %vm202_vm14 = vweird.f32 %v1179_v10 }
  0xb9   :  { %942 = vrcp.f32 %v1177_v7  ;;  %vm203_vm15 = vmor %vm201_vm13, %vm202_vm14  ;;  %vm216_vm2 = vweird.f32 %v1177_v7  ;;  %v220_v8 = vand.u32 2147483647, %v1177_v7 }
  0xbb   :  { %v113_v31 = vpop.f32.mrf.mxu0  ;;  %vm221_vm5 = vcmp.eq.f32.partialorder %v220_v8, 8.507059e+37 }
  0xbc   :  { %v1139_v32 = vadd.f32 %v920_v12, %v113_v31  ;;  %v198_v31 = vsub.f32 1.0, %v197_v20 }
  0xbe   :  { %v277_v33 = vmax.f32 %v1139_v32, 0.0  ;;  %v875_v13 = vmul.f32 -1.442695, %v1139_v32  ;;  %v941_v23 = vpop.eup %940  ;;  %v199_v43 = vmul.f32 %v1179_v10, %v198_v31 }
  0xc0   :  { %347 = vrot.lane.b32.xlu1 %v1139_v32, %s1042_s28  ;;  %299 = vrot.lane.b32.xlu0 %v277_v33, %s1041_s27  ;;  %944 = vpow2.f32 %v875_v13  ;;  %v1198_v32 = vpop.eup %942  ;;  %v1200_v33 = vadd.f32 1.0, %v941_v23  ;;  %v200_v50 = vadd.f32 %v1179_v10, %v199_v43 }
  0xc1   :  { %v212_v41 = vmul.f32 %v1198_v32, %v1177_v7  ;;  %vm217_vm3 = vweird.f32 %v1198_v32 }
  0xc2   :  { %946 = vrcp.f32 %v1200_v33  ;;  %v204_v60 = vsel %vm203_vm15, %v1179_v10, %v200_v50  ;;  %vm218_vm4 = vmor %vm216_vm2, %vm217_vm3  ;;  %vm231_vm6 = vweird.f32 %v1200_v33 }
  0xc3   :  { %v116_v34 = vpop.f32.mrf.mxu0  ;;  %v213_v49 = vsub.f32 1.0, %v212_v41 }
  0xc4   :  { %v1145_v35 = vadd.f32 %v920_v12, %v116_v34  ;;  %v170_v12 = vadd.f32 %v931_v53, %v169_v5  ;;  %v192_v34 = vand.u32 2147483648, %v1166_v52  ;;  %v207_v52 = vand.u32 2147483648, %v1170_v59 }
  0xc5   :  { %v214_v58 = vmul.f32 %v1198_v32, %v213_v49  ;;  %v222_v5 = vand.u32 2147483648, %v1177_v7 }
  0xc6   :  { %v278_v36 = vmax.f32 %v1145_v35, 0.0  ;;  %v174_v21 = vsel %vm1187_vm7, %v931_v53, %v170_v12  ;;  %v945_v39 = vpop.eup %944  ;;  %v193_v44 = vor.u32 1.1754944e-38, %v192_v34  ;;  %v208_v61 = vor.u32 1.1754944e-38, %v207_v52 }
  0xc7   :  { %v179_v29 = vsel %vm176_vm10, %v178_v25, %v174_v21  ;;  %v1211_v46 = vadd.f32 1.0, %v945_v39  ;;  %v223_v15 = vor.u32 1.1754944e-38, %v222_v5  ;;  %v237_v25 = vand.u32 2147483648, %v1200_v33 }
  0xc8   :  { %301 = vrot.lane.b32.xlu2 %v278_v36, %s1041_s27  ;;  %349 = vrot.lane.b32.xlu0 %v1145_v35, %s1042_s28  ;;  %v876_v36 = vmul.f32 -1.442695, %v1145_v35  ;;  %v320_v38 = vsub.f32 1.0, %v179_v29  ;;  %v194_v47 = vsel %vm191_vm12, %v193_v44, %v189_v40  ;;  %v1219_v55 = vpop.eup %946  ;;  %v209_v59 = vsel %vm206_vm1, %v208_v61, %v204_v60 }
  0xc9   :  { %v321_v53 = vsub.f32 1.0, %v194_v47  ;;  %v227_v63 = vmul.f32 %v1219_v55, %v1200_v33  ;;  %v322_v10 = vsub.f32 1.0, %v209_v59  ;;  %vm232_vm7 = vweird.f32 %v1219_v55 }
  0xca   :  { %948 = vpow2.f32 %v876_v36  ;;  %vm233_vm8 = vmor %vm231_vm6, %vm232_vm7  ;;  %v238_v31 = vor.u32 1.1754944e-38, %v237_v25  ;;  %vm246_vm10 = vweird.f32 %v1211_v46  ;;  %v250_v39 = vand.u32 2147483647, %v1211_v46 }
  0xcb   :  { %950 = vrcp.f32 %v1211_v46  ;;  %v228_v9 = vsub.f32 1.0, %v227_v63 }
  0xcc   :  { %vm251_vm13 = vcmp.eq.f32.partialorder %v250_v39, 8.507059e+37  ;;  %v709_v39 = vld [vmem:[#allocation2 + $0x18] sm:$0xff] }
  0xcd   :  { %v229_v16 = vmul.f32 %v1219_v55, %v228_v9 }
  0xd0   :  { %v949_v56 = vpop.eup %948 }
  0xd1   :  { %v1226_v0 = vadd.f32 1.0, %v949_v56  ;;  %v951_v4 = vpop.eup %950 }
  0xd2   :  { %v242_v14 = vmul.f32 %v951_v4, %v1211_v46  ;;  %vm247_vm11 = vweird.f32 %v951_v4 }
  0xd3   :  { %952 = vrcp.f32 %v1226_v0  ;;  %vm248_vm12 = vmor %vm246_vm10, %vm247_vm11  ;;  %vm261_vm14 = vweird.f32 %v1226_v0 }
  0xd4   :  { %v243_v7 = vsub.f32 1.0, %v242_v14 }
  0xd6   :  { %v244_v28 = vmul.f32 %v951_v4, %v243_v7 }
  0xd8   :  { %v245_v37 = vadd.f32 %v951_v4, %v244_v28 }
  0xda   :  { %v249_v44 = vsel %vm248_vm12, %v951_v4, %v245_v37 }
  0xfa   :  { %v292_v27 = vpop.permute.xlu2 %291 }
  0xfb   :  { %v313_v62 = vmul.f32 %v292_v27, %v194_v47 }
 0x102   :  { %v288_v3 = vpop.permute.xlu0 %287  ;;  %v340_v51 = vpop.permute.xlu2 %339 }
 0x103   :  { %v311_v24 = vmul.f32 %v288_v3, %v164_v11  ;;  %v361_v57 = vmul.f32 %v340_v51, %v321_v53  ;;  %v215_v3 = vadd.f32 %v1198_v32, %v214_v58  ;;  %v267_v51 = vand.u32 2147483648, %v1226_v0 }
 0x105   :  { %v369_v2 = vadd.f32 %v361_v57, %v313_v62  ;;  %v219_v11 = vsel %vm218_vm4, %v1198_v32, %v215_v3  ;;  %v268_v57 = vor.u32 1.1754944e-38, %v267_v51 }
 0x10a   :  { %v290_v17 = vpop.permute.xlu1 %289  ;;  %v336_v22 = vpop.permute.xlu0 %335 }
 0x10b   :  { %v359_v26 = vmul.f32 %v336_v22, %v319_v19  ;;  %v312_v45 = vmul.f32 %v290_v17, %v179_v29  ;;  %v224_v17 = vsel %vm221_vm5, %v223_v15, %v219_v11  ;;  %v953_v19 = vpop.eup %952  ;;  %v296_v20 = vpop.permute.xlu2 %295  ;;  %v230_v22 = vadd.f32 %v1219_v55, %v229_v16 }
 0x10c   :  { %v323_v23 = vsub.f32 1.0, %v224_v17  ;;  %v315_v29 = vmul.f32 %v296_v20, %v224_v17  ;;  %vm262_vm15 = vweird.f32 %v953_v19 }
 0x10d   :  { %v367_v30 = vadd.f32 %v359_v26, %v311_v24  ;;  %v235_v24 = vand.u32 2147483647, %v1200_v33  ;;  %v257_v26 = vmul.f32 %v953_v19, %v1226_v0  ;;  %v252_v33 = vand.u32 2147483648, %v1211_v46  ;;  %vm263_vm1 = vmor %vm261_vm14, %vm262_vm15 }
 0x10e   :  { %v265_v46 = vand.u32 2147483647, %v1226_v0  ;;  %v921_v0 = vld [vmem:[%s1388_s2 + $0x1] ss:$0 sm:$0xff] }
 0x10f   :  { %882 = vmatmul.msk.f32.vlgmr.msra.gmra.mxu1 %vm53_vm0, %v367_v30  ;;  %v234_v30 = vsel %vm233_vm8, %v1219_v55, %v230_v22  ;;  %vm236_vm9 = vcmp.eq.f32.partialorder %v235_v24, 8.507059e+37  ;;  %v258_v34 = vsub.f32 1.0, %v257_v26 }
 0x110   :  { %vm266_vm2 = vcmp.eq.f32.partialorder %v265_v46, 8.507059e+37 }
 0x112   :  { %v338_v42 = vpop.permute.xlu1 %337 }
 0x113   :  { %v360_v35 = vmul.f32 %v338_v42, %v320_v38  ;;  %v239_v38 = vsel %vm236_vm9, %v238_v31, %v234_v30  ;;  %v346_v40 = vpop.permute.xlu2 %345  ;;  %v259_v42 = vmul.f32 %v953_v19, %v258_v34  ;;  %v712_v30 = vld [vmem:[#allocation2 + $0x30] sm:$0xff]  ;;  %v713_v31 = vld [vmem:[#allocation2 + $0x38] sm:$0xff]  ;;  %v711_v34 = vld [vmem:[#allocation2 + $0x28] sm:$0xff] }
 0x114   :  { %v324_v41 = vsub.f32 1.0, %v239_v38  ;;  %756 = vmatpush.msra.mxu2 %v712_v30  ;;  %797 = vmatpush.msra.mxu3 %v713_v31 }
 0x115   :  { %v368_v48 = vadd.f32 %v360_v35, %v312_v45  ;;  %v253_v45 = vor.u32 1.1754944e-38, %v252_v33  ;;  %v260_v49 = vadd.f32 %v953_v19, %v259_v42  ;;  %v708_v33 = vld [vmem:[#allocation2 + $0x10] sm:$0xff] }
 0x116   :  { %v364_v35 = vmul.f32 %v346_v40, %v324_v41  ;;  %798 = vmatpush.msra.mxu3 %v711_v34  ;;  %v706_v40 = vld [vmem:[#allocation2] sm:$0xff]  ;;  %v707_v41 = vld [vmem:[#allocation2 + $0x8] sm:$0xff] }
 0x117   :  { %883 = vmatmul.msk.f32.gmra.mxu1 %vm53_vm0, %v368_v48  ;;  %v254_v47 = vsel %vm251_vm13, %v253_v45, %v249_v44  ;;  %v264_v54 = vsel %vm263_vm1, %v953_v19, %v260_v49 }
 0x118   :  { %v325_v53 = vsub.f32 1.0, %v254_v47  ;;  %v269_v58 = vsel %vm266_vm2, %v268_v57, %v264_v54  ;;  %799 = vmatpush.msra.mxu3 %v709_v39 }
 0x119   :  { %v326_v62 = vsub.f32 1.0, %v269_v58 }
 0x11a   :  { %v342_v6 = vpop.permute.xlu1 %341  ;;  %800 = vmatpush.msra.mxu3 %v707_v41 }
 0x11b   :  { %v294_v1 = vpop.permute.xlu0 %293  ;;  %v362_v12 = vmul.f32 %v342_v6, %v322_v10 }
 0x11c   :  { %v314_v13 = vmul.f32 %v294_v1, %v209_v59 }
 0x11e   :  { %v370_v18 = vadd.f32 %v362_v12, %v314_v13 }
 0x11f   :  { %884 = vmatmul.msk.f32.gmra.mxu1 %vm53_vm0, %v369_v2 }
 0x122   :  { %v302_v63 = vpop.permute.xlu2 %301 }
 0x123   :  { %v344_v21 = vpop.permute.xlu0 %343  ;;  %v318_v1 = vmul.f32 %v302_v63, %v269_v58 }
 0x124   :  { %v363_v27 = vmul.f32 %v344_v21, %v323_v23 }
 0x126   :  { %v371_v36 = vadd.f32 %v363_v27, %v315_v29 }
 0x127   :  { %885 = vmatmul.msk.f32.gmra.mxu1 %vm53_vm0, %v370_v18 }
 0x12a   :  { %v298_v32 = vpop.permute.xlu1 %297 }
 0x12b   :  { %v316_v43 = vmul.f32 %v298_v32, %v239_v38  ;;  %v710_v32 = vld [vmem:[#allocation2 + $0x20] sm:$0xff] }
 0x12c   :  { %757 = vmatpush.msra.mxu2 %v710_v32 }
 0x12d   :  { %v372_v50 = vadd.f32 %v364_v35, %v316_v43 }
 0x12e   :  { %758 = vmatpush.msra.mxu2 %v708_v33 }
 0x12f   :  { %886 = vmatmul.msk.f32.gmra.mxu1 %vm53_vm0, %v371_v36 }
 0x130   :  { %759 = vmatpush.msra.mxu2 %v706_v40 }
 0x132   :  { %v300_v48 = vpop.permute.xlu0 %299  ;;  %v348_v52 = vpop.permute.xlu1 %347 }
 0x133   :  { %v365_v55 = vmul.f32 %v348_v52, %v325_v53  ;;  %v317_v56 = vmul.f32 %v300_v48, %v254_v47 }
 0x135   :  { %v373_v60 = vadd.f32 %v365_v55, %v317_v56 }
 0x137   :  { %887 = vmatmul.msk.f32.gmra.mxu1 %vm53_vm0, %v372_v50 }
 0x13a   :  { %v350_v61 = vpop.permute.xlu0 %349 }
 0x13b   :  { %v366_v59 = vmul.f32 %v350_v61, %v326_v62 }
 0x13d   :  { %v374_v2 = vadd.f32 %v366_v59, %v318_v1 }
 0x13f   :  { %888 = vmatmul.msk.f32.gmra.mxu1 %vm53_vm0, %v373_v60 }
 0x147   :  { %889 = vmatmul.msk.f32.gmra.mxu1 %vm53_vm0, %v374_v2 }
 0x18c   :  { %v426_v3 = vpop.f32.mrf.mxu1 }
 0x18d   :  { %v427_v4 = vadd.f32 %v921_v0, %v426_v3 }
 0x18f   :  { %666 = vrot.lane.b32.xlu2 %v427_v4, %s1042_s28  ;;  %v602_v5 = vmax.f32 %v427_v4, 0.0  ;;  %v890_v27 = vmul.f32 -1.442695, %v427_v4 }
 0x191   :  { %618 = vrot.lane.b32.xlu1 %v602_v5, %s1041_s27  ;;  %954 = vpow2.f32 %v890_v27 }
 0x194   :  { %v429_v6 = vpop.f32.mrf.mxu1 }
 0x195   :  { %v430_v8 = vadd.f32 %v921_v0, %v429_v6 }
 0x197   :  { %v603_v9 = vmax.f32 %v430_v8, 0.0  ;;  %v891_v28 = vmul.f32 -1.442695, %v430_v8  ;;  %v955_v29 = vpop.eup %954 }
 0x198   :  { %v474_v36 = vadd.f32 1.0, %v955_v29 }
 0x199   :  { %620 = vrot.lane.b32.xlu0 %v603_v9, %s1041_s27  ;;  %668 = vrot.lane.b32.xlu1 %v430_v8, %s1042_s28  ;;  %956 = vpow2.f32 %v891_v28 }
 0x19a   :  { %958 = vrcp.f32 %v474_v36  ;;  %v493_v58 = vand.u32 2147483648, %v474_v36  ;;  %vm487_vm4 = vweird.f32 %v474_v36  ;;  %v491_v60 = vand.u32 2147483647, %v474_v36 }
 0x19c   :  { %v432_v10 = vpop.f32.mrf.mxu1  ;;  %v494_v1 = vor.u32 1.1754944e-38, %v493_v58  ;;  %vm492_vm6 = vcmp.eq.f32.partialorder %v491_v60, 8.507059e+37 }
 0x19d   :  { %v433_v11 = vadd.f32 %v921_v0, %v432_v10 }
 0x19f   :  { %v604_v12 = vmax.f32 %v433_v11, 0.0  ;;  %v892_v37 = vmul.f32 -1.442695, %v433_v11  ;;  %v957_v38 = vpop.eup %956 }
 0x1a0   :  { %v475_v42 = vadd.f32 1.0, %v957_v38  ;;  %v959_v43 = vpop.eup %958 }
 0x1a1   :  { %670 = vrot.lane.b32.xlu0 %v433_v11, %s1042_s28  ;;  %622 = vrot.lane.b32.xlu2 %v604_v12, %s1041_s27  ;;  %960 = vpow2.f32 %v892_v37  ;;  %v483_v35 = vmul.f32 %v959_v43, %v474_v36  ;;  %vm488_vm3 = vweird.f32 %v959_v43 }
 0x1a2   :  { %962 = vrcp.f32 %v475_v42  ;;  %vm489_vm5 = vmor %vm487_vm4, %vm488_vm3  ;;  %v508_v8 = vand.u32 2147483648, %v475_v42  ;;  %vm502_vm8 = vweird.f32 %v475_v42  ;;  %v506_v11 = vand.u32 2147483647, %v475_v42 }
 0x1a3   :  { %v484_v48 = vsub.f32 1.0, %v483_v35 }
 0x1a4   :  { %v435_v13 = vpop.f32.mrf.mxu1  ;;  %vm507_vm10 = vcmp.eq.f32.partialorder %v506_v11, 8.507059e+37 }
 0x1a5   :  { %v436_v14 = vadd.f32 %v921_v0, %v435_v13  ;;  %v485_v52 = vmul.f32 %v959_v43, %v484_v48 }
 0x1a7   :  { %v605_v15 = vmax.f32 %v436_v14, 0.0  ;;  %v893_v44 = vmul.f32 -1.442695, %v436_v14  ;;  %v961_v45 = vpop.eup %960  ;;  %v486_v55 = vadd.f32 %v959_v43, %v485_v52 }
 0x1a8   :  { %v1283_v47 = vadd.f32 1.0, %v961_v45  ;;  %v963_v49 = vpop.eup %962 }
 0x1a9   :  { %672 = vrot.lane.b32.xlu2 %v436_v14, %s1042_s28  ;;  %624 = vrot.lane.b32.xlu1 %v605_v15, %s1041_s27  ;;  %964 = vpow2.f32 %v893_v44  ;;  %v498_v46 = vmul.f32 %v963_v49, %v475_v42  ;;  %v490_v63 = vsel %vm489_vm5, %v959_v43, %v486_v55  ;;  %vm503_vm7 = vweird.f32 %v963_v49 }
 0x1aa   :  { %966 = vrcp.f32 %v1283_v47  ;;  %vm504_vm9 = vmor %vm502_vm8, %vm503_vm7  ;;  %vm517_vm12 = vweird.f32 %v1283_v47  ;;  %v521_v29 = vand.u32 2147483647, %v1283_v47 }
 0x1ab   :  { %v499_v56 = vsub.f32 1.0, %v498_v46 }
 0x1ac   :  { %v438_v16 = vpop.f32.mrf.mxu1  ;;  %vm522_vm14 = vcmp.eq.f32.partialorder %v521_v29, 8.507059e+37 }
 0x1ad   :  { %v439_v17 = vadd.f32 %v921_v0, %v438_v16  ;;  %v500_v59 = vmul.f32 %v963_v49, %v499_v56 }
 0x1af   :  { %v606_v18 = vmax.f32 %v439_v17, 0.0  ;;  %v894_v50 = vmul.f32 -1.442695, %v439_v17  ;;  %v965_v51 = vpop.eup %964  ;;  %v501_v4 = vadd.f32 %v963_v49, %v500_v59 }
 0x1b0   :  { %v1286_v53 = vadd.f32 1.0, %v965_v51  ;;  %v1288_v54 = vpop.eup %966 }
 0x1b1   :  { %626 = vrot.lane.b32.xlu0 %v606_v18, %s1041_s27  ;;  %674 = vrot.lane.b32.xlu1 %v439_v17, %s1042_s28  ;;  %968 = vpow2.f32 %v894_v50  ;;  %v513_v61 = vmul.f32 %v1288_v54, %v1283_v47  ;;  %v505_v18 = vsel %vm504_vm9, %v963_v49, %v501_v4  ;;  %vm518_vm11 = vweird.f32 %v1288_v54 }
 0x1b2   :  { %970 = vrcp.f32 %v1286_v53  ;;  %vm1314_vm13 = vmor %vm517_vm12, %vm518_vm11  ;;  %vm532_vm1 = vweird.f32 %v1286_v53  ;;  %v536_v48 = vand.u32 2147483647, %v1286_v53 }
 0x1b3   :  { %v514_v3 = vsub.f32 1.0, %v513_v61 }
 0x1b4   :  { %v441_v7 = vpop.f32.mrf.mxu1  ;;  %vm537_vm3 = vcmp.eq.f32.partialorder %v536_v48, 8.507059e+37 }
 0x1b5   :  { %v442_v19 = vadd.f32 %v921_v0, %v441_v7  ;;  %v515_v13 = vmul.f32 %v1288_v54, %v514_v3  ;;  %v509_v7 = vor.u32 1.1754944e-38, %v508_v8 }
 0x1b7   :  { %v607_v20 = vmax.f32 %v442_v19, 0.0  ;;  %v895_v57 = vmul.f32 -1.442695, %v442_v19  ;;  %v969_v62 = vpop.eup %968 }
 0x1b8   :  { %v1293_v2 = vadd.f32 1.0, %v969_v62  ;;  %v1295_v5 = vpop.eup %970 }
 0x1b9   :  { %676 = vrot.lane.b32.xlu0 %v442_v19, %s1042_s28  ;;  %628 = vrot.lane.b32.xlu2 %v607_v20, %s1041_s27  ;;  %972 = vpow2.f32 %v895_v57  ;;  %v528_v16 = vmul.f32 %v1295_v5, %v1286_v53  ;;  %vm533_vm15 = vweird.f32 %v1295_v5 }
 0x1ba   :  { %974 = vrcp.f32 %v1293_v2  ;;  %vm534_vm2 = vmor %vm532_vm1, %vm533_vm15  ;;  %vm547_vm5 = vweird.f32 %v1293_v2  ;;  %v551_v3 = vand.u32 2147483647, %v1293_v2 }
 0x1bc   :  { %v444_v21 = vpop.f32.mrf.mxu1  ;;  %vm552_vm7 = vcmp.eq.f32.partialorder %v551_v3, 8.507059e+37 }
 0x1bd   :  { %v1271_v22 = vadd.f32 %v921_v0, %v444_v21  ;;  %v516_v21 = vadd.f32 %v1288_v54, %v515_v13 }
 0x1bf   :  { %v608_v23 = vmax.f32 %v1271_v22, 0.0  ;;  %v896_v9 = vmul.f32 -1.442695, %v1271_v22  ;;  %v973_v12 = vpop.eup %972  ;;  %v520_v31 = vsel %vm1314_vm13, %v1288_v54, %v516_v21 }
 0x1c0   :  { %v1302_v19 = vadd.f32 1.0, %v973_v12 }
 0x1c1   :  { %678 = vrot.lane.b32.xlu2 %v1271_v22, %s1042_s28  ;;  %630 = vrot.lane.b32.xlu1 %v608_v23, %s1041_s27  ;;  %976 = vpow2.f32 %v896_v9  ;;  %v510_v22 = vsel %vm507_vm10, %v509_v7, %v505_v18  ;;  %v529_v23 = vsub.f32 1.0, %v528_v16 }
 0x1c2   :  { %978 = vrcp.f32 %v1302_v19  ;;  %v651_v30 = vsub.f32 1.0, %v510_v22  ;;  %vm562_vm9 = vweird.f32 %v1302_v19  ;;  %v568_v16 = vand.u32 2147483648, %v1302_v19 }
 0x1c3   :  { %v530_v37 = vmul.f32 %v1295_v5, %v529_v23 }
 0x1c4   :  { %v447_v24 = vpop.f32.mrf.mxu1 }
 0x1c5   :  { %v1277_v25 = vadd.f32 %v921_v0, %v447_v24  ;;  %v495_v0 = vsel %vm492_vm6, %v494_v1, %v490_v63  ;;  %v1308_v24 = vpop.eup %974  ;;  %v531_v45 = vadd.f32 %v1295_v5, %v530_v37  ;;  %v553_v1 = vand.u32 2147483648, %v1293_v2 }
 0x1c6   :  { %v650_v10 = vsub.f32 1.0, %v495_v0  ;;  %vm548_vm4 = vweird.f32 %v1308_v24 }
 0x1c7   :  { %v609_v26 = vmax.f32 %v1277_v25, 0.0  ;;  %v897_v27 = vmul.f32 -1.442695, %v1277_v25  ;;  %v977_v36 = vpop.eup %976  ;;  %v535_v54 = vsel %vm534_vm2, %v1295_v5, %v531_v45  ;;  %vm549_vm6 = vmor %vm547_vm5, %vm548_vm4  ;;  %v554_v11 = vor.u32 1.1754944e-38, %v553_v1 }
 0x1c8   :  { %v1325_v41 = vadd.f32 1.0, %v977_v36  ;;  %v1327_v44 = vpop.eup %978 }
 0x1c9   :  { %632 = vrot.lane.b32.xlu0 %v609_v26, %s1041_s27  ;;  %680 = vrot.lane.b32.xlu1 %v1277_v25, %s1042_s28  ;;  %v523_v26 = vand.u32 2147483648, %v1283_v47  ;;  %v543_v25 = vmul.f32 %v1308_v24, %v1293_v2  ;;  %980 = vpow2.f32 %v897_v27  ;;  %v538_v47 = vand.u32 2147483648, %v1286_v53 }
 0x1ca   :  { %982 = vrcp.f32 %v1325_v41  ;;  %v558_v51 = vmul.f32 %v1327_v44, %v1302_v19  ;;  %vm563_vm8 = vweird.f32 %v1327_v44  ;;  %v569_v27 = vor.u32 1.1754944e-38, %v568_v16 }
 0x1cb   :  { %v524_v39 = vor.u32 1.1754944e-38, %v523_v26  ;;  %v544_v35 = vsub.f32 1.0, %v543_v25  ;;  %v539_v57 = vor.u32 1.1754944e-38, %v538_v47  ;;  %vm564_vm10 = vmor %vm562_vm9, %vm563_vm8  ;;  %vm577_vm13 = vweird.f32 %v1325_v41 }
 0x1cc   :  { %v559_v61 = vsub.f32 1.0, %v558_v51 }
 0x1cd   :  { %v525_v42 = vsel %vm522_vm14, %v524_v39, %v520_v31  ;;  %v545_v56 = vmul.f32 %v1308_v24, %v544_v35  ;;  %v540_v53 = vsel %vm537_vm3, %v539_v57, %v535_v54 }
 0x1ce   :  { %v652_v49 = vsub.f32 1.0, %v525_v42  ;;  %v560_v4 = vmul.f32 %v1327_v44, %v559_v61 }
 0x1cf   :  { %v981_v52 = vpop.eup %980  ;;  %v546_v62 = vadd.f32 %v1308_v24, %v545_v56 }
 0x1d0   :  { %v1341_v60 = vadd.f32 1.0, %v981_v52  ;;  %v983_v63 = vpop.eup %982  ;;  %v561_v13 = vadd.f32 %v1327_v44, %v560_v4 }
 0x1d1   :  { %v573_v8 = vmul.f32 %v983_v63, %v1325_v41  ;;  %vm578_vm12 = vweird.f32 %v983_v63 }
 0x1d2   :  { %984 = vrcp.f32 %v1341_v60  ;;  %v565_v7 = vsel %vm564_vm10, %v1327_v44, %v561_v13  ;;  %vm579_vm14 = vmor %vm577_vm13, %vm578_vm12  ;;  %vm592_vm2 = vweird.f32 %v1341_v60  ;;  %v596_v47 = vand.u32 2147483647, %v1341_v60 }
 0x1d4   :  { %vm597_vm4 = vcmp.eq.f32.partialorder %v596_v47, 8.507059e+37 }
 0x1e9   :  { %v667_v6 = vpop.permute.xlu2 %666 }
 0x1ea   :  { %v690_v15 = vmul.f32 %v667_v6, %v650_v10  ;;  %v550_v10 = vsel %vm549_vm6, %v1308_v24, %v546_v62 }
 0x1eb   :  { %v555_v2 = vsel %vm552_vm7, %v554_v11, %v550_v10 }
 0x1ec   :  { %v654_v18 = vsub.f32 1.0, %v555_v2 }
 0x1fb   :  { %v623_v43 = vpop.permute.xlu2 %622 }
 0x1fc   :  { %v644_v46 = vmul.f32 %v623_v43, %v525_v42 }
 0x203   :  { %v619_v14 = vpop.permute.xlu1 %618  ;;  %v673_v59 = vpop.permute.xlu2 %672 }
 0x204   :  { %v642_v17 = vmul.f32 %v619_v14, %v495_v0  ;;  %v653_v0 = vsub.f32 1.0, %v540_v53  ;;  %v574_v14 = vsub.f32 1.0, %v573_v8 }
 0x206   :  { %v698_v20 = vadd.f32 %v690_v15, %v642_v17  ;;  %v693_v6 = vmul.f32 %v673_v59, %v653_v0  ;;  %v985_v15 = vpop.eup %984  ;;  %v566_v17 = vand.u32 2147483647, %v1302_v19 }
 0x207   :  { %v588_v26 = vmul.f32 %v985_v15, %v1341_v60  ;;  %vm593_vm1 = vweird.f32 %v985_v15 }
 0x208   :  { %898 = vmatmul.msk.f32.vlgmr.msra.gmra.mxu2 %vm53_vm0, %v698_v20  ;;  %906 = vmatmul.msk.f32.vlgmr.msra.gmra.mxu3 %vm53_vm0, %v698_v20  ;;  %vm567_vm11 = vcmp.eq.f32.partialorder %v566_v17, 8.507059e+37  ;;  %vm594_vm3 = vmor %vm592_vm2, %vm593_vm1 }
 0x209   :  { %v570_v29 = vsel %vm567_vm11, %v569_v27, %v565_v7  ;;  %v589_v19 = vsub.f32 1.0, %v588_v26 }
 0x20a   :  { %v655_v36 = vsub.f32 1.0, %v570_v29 }
 0x20b   :  { %v621_v32 = vpop.permute.xlu0 %620  ;;  %v669_v34 = vpop.permute.xlu1 %668  ;;  %v590_v39 = vmul.f32 %v985_v15, %v589_v19 }
 0x20c   :  { %v643_v38 = vmul.f32 %v621_v32, %v510_v22  ;;  %v691_v33 = vmul.f32 %v669_v34, %v651_v30  ;;  %v575_v22 = vmul.f32 %v983_v63, %v574_v14  ;;  %v583_v32 = vand.u32 2147483648, %v1325_v41 }
 0x20d   :  { %v581_v34 = vand.u32 2147483647, %v1325_v41  ;;  %v591_v44 = vadd.f32 %v985_v15, %v590_v39  ;;  %v598_v41 = vand.u32 2147483648, %v1341_v60  ;;  %v714_v60 = vld [vmem:[%s1390_s4] sm:$0x3]  ;;  %s1043_s4 = smov [#allocation5]  }
 0x20e   :  { %v699_v40 = vadd.f32 %v691_v33, %v643_v38  ;;  %v576_v31 = vadd.f32 %v983_v63, %v575_v22  ;;  %v716_v62 = vperm.slane %v714_v60, 0  ;;  %s846_s12 = sshll.u32 %s1043_s4, 4  ;;  %s847_s12 = int_to_ptr.vmem [resolvable:$true] %s846_s12 }
 0x20f   :  { %vm582_vm15 = vcmp.eq.f32.partialorder %v581_v34, 8.507059e+37  ;;  %v595_v51 = vsel %vm594_vm3, %v985_v15, %v591_v44  ;;  %v599_v52 = vor.u32 1.1754944e-38, %v598_v41 }
 0x210   :  { %899 = vmatmul.msk.f32.gmra.mxu2 %vm53_vm0, %v699_v40  ;;  %907 = vmatmul.msk.f32.gmra.mxu3 %vm53_vm0, %v699_v40  ;;  %v580_v33 = vsel %vm579_vm14, %v983_v63, %v576_v31  ;;  %v584_v40 = vor.u32 1.1754944e-38, %v583_v32  ;;  %v717_v63 = vperm.slane %v714_v60, 1 }
 0x211   :  { %v600_v54 = vsel %vm597_vm4, %v599_v52, %v595_v51 }
 0x212   :  { %v585_v43 = vsel %vm582_vm15, %v584_v40, %v580_v33 }
 0x213   :  { %v671_v50 = vpop.permute.xlu0 %670  ;;  %v629_v30 = vpop.permute.xlu2 %628  ;;  %v656_v35 = vsub.f32 1.0, %v585_v43 }
 0x214   :  { %v692_v55 = vmul.f32 %v671_v50, %v652_v49  ;;  %v647_v38 = vmul.f32 %v629_v30, %v570_v29 }
 0x216   :  { %v700_v58 = vadd.f32 %v692_v55, %v644_v46  ;;  %v657_v55 = vsub.f32 1.0, %v600_v54 }
 0x218   :  { %900 = vmatmul.msk.f32.gmra.mxu2 %vm53_vm0, %v700_v58  ;;  %908 = vmatmul.msk.f32.gmra.mxu3 %vm53_vm0, %v700_v58 }
 0x21b   :  { %v625_v5 = vpop.permute.xlu1 %624  ;;  %v679_v45 = vpop.permute.xlu2 %678 }
 0x21c   :  { %v645_v9 = vmul.f32 %v625_v5, %v540_v53  ;;  %v696_v49 = vmul.f32 %v679_v45, %v656_v35 }
 0x21e   :  { %v701_v12 = vadd.f32 %v693_v6, %v645_v9 }
 0x220   :  { %901 = vmatmul.msk.f32.gmra.mxu2 %vm53_vm0, %v701_v12  ;;  %909 = vmatmul.msk.f32.gmra.mxu3 %vm53_vm0, %v701_v12 }
 0x223   :  { %v627_v20 = vpop.permute.xlu0 %626  ;;  %v675_v21 = vpop.permute.xlu1 %674 }
 0x224   :  { %v646_v23 = vmul.f32 %v627_v20, %v555_v2  ;;  %v694_v24 = vmul.f32 %v675_v21, %v654_v18 }
 0x226   :  { %v702_v28 = vadd.f32 %v694_v24, %v646_v23 }
 0x228   :  { %902 = vmatmul.msk.f32.gmra.mxu2 %vm53_vm0, %v702_v28  ;;  %910 = vmatmul.msk.f32.gmra.mxu3 %vm53_vm0, %v702_v28 }
 0x22b   :  { %v677_v37 = vpop.permute.xlu0 %676 }
 0x22c   :  { %v695_v25 = vmul.f32 %v677_v37, %v655_v36 }
 0x22e   :  { %v703_v42 = vadd.f32 %v695_v25, %v647_v38 }
 0x230   :  { %903 = vmatmul.msk.f32.gmra.mxu2 %vm53_vm0, %v703_v42  ;;  %911 = vmatmul.msk.f32.gmra.mxu3 %vm53_vm0, %v703_v42 }
 0x233   :  { %v631_v48 = vpop.permute.xlu1 %630 }
 0x234   :  { %v648_v50 = vmul.f32 %v631_v48, %v585_v43 }
 0x236   :  { %v704_v46 = vadd.f32 %v696_v49, %v648_v50 }
 0x238   :  { %904 = vmatmul.msk.f32.gmra.mxu2 %vm53_vm0, %v704_v46  ;;  %912 = vmatmul.msk.f32.gmra.mxu3 %vm53_vm0, %v704_v46 }
 0x23b   :  { %v633_v56 = vpop.permute.xlu0 %632  ;;  %v681_v57 = vpop.permute.xlu1 %680 }
 0x23c   :  { %v649_v58 = vmul.f32 %v633_v56, %v600_v54  ;;  %v697_v53 = vmul.f32 %v681_v57, %v657_v55 }
 0x23e   :  { %v705_v61 = vadd.f32 %v697_v53, %v649_v58 }
 0x240   :  { %905 = vmatmul.msk.f32.gmra.mxu2 %vm53_vm0, %v705_v61  ;;  %913 = vmatmul.msk.f32.gmra.mxu3 %vm53_vm0, %v705_v61 }
 0x28b   :  { %v761_v59 = vpop.f32.mrf.mxu2  ;;  %v802_v1 = vpop.f32.mrf.mxu3 }
 0x28c   :  { %v762_v0 = vadd.f32 %v761_v59, %v716_v62  ;;  %v803_v3 = vadd.f32 %v802_v1, %v717_v63 }
 0x28e   :  { %826 = vst [vmem:[#allocation5] sm:$0xff] %v762_v0 }
 0x28f   :  { %827 = vst [vmem:[#allocation5 + $0x8] sm:$0xff] %v803_v3 }
 0x293   :  { %v764_v4 = vpop.f32.mrf.mxu2  ;;  %v805_v5 = vpop.f32.mrf.mxu3 }
 0x294   :  { %v765_v6 = vadd.f32 %v764_v4, %v716_v62  ;;  %v806_v8 = vadd.f32 %v805_v5, %v717_v63 }
 0x296   :  { %828 = vst [vmem:[#allocation5 + $0x10] sm:$0xff] %v765_v6 }
 0x297   :  { %829 = vst [vmem:[#allocation5 + $0x18] sm:$0xff] %v806_v8 }
 0x29b   :  { %v767_v9 = vpop.f32.mrf.mxu2  ;;  %v808_v10 = vpop.f32.mrf.mxu3 }
 0x29c   :  { %v768_v11 = vadd.f32 %v767_v9, %v716_v62  ;;  %v809_v12 = vadd.f32 %v808_v10, %v717_v63 }
 0x29e   :  { %830 = vst [vmem:[#allocation5 + $0x20] sm:$0xff] %v768_v11 }
 0x29f   :  { %831 = vst [vmem:[#allocation5 + $0x28] sm:$0xff] %v809_v12 }
 0x2a3   :  { %v770_v13 = vpop.f32.mrf.mxu2  ;;  %v811_v2 = vpop.f32.mrf.mxu3 }
 0x2a4   :  { %v771_v14 = vadd.f32 %v770_v13, %v716_v62  ;;  %v812_v15 = vadd.f32 %v811_v2, %v717_v63 }
 0x2a6   :  { %832 = vst [vmem:[#allocation5 + $0x30] sm:$0xff] %v771_v14 }
 0x2a7   :  { %833 = vst [vmem:[#allocation5 + $0x38] sm:$0xff] %v812_v15 }
 0x2ab   :  { %v773_v16 = vpop.f32.mrf.mxu2  ;;  %v814_v17 = vpop.f32.mrf.mxu3 }
 0x2ac   :  { %v774_v18 = vadd.f32 %v773_v16, %v716_v62  ;;  %v815_v7 = vadd.f32 %v814_v17, %v717_v63 }
 0x2ae   :  { %834 = vst [vmem:[#allocation5 + $0x40] sm:$0xff] %v774_v18 }
 0x2af   :  { %835 = vst [vmem:[#allocation5 + $0x48] sm:$0xff] %v815_v7 }
 0x2b3   :  { %v776_v20 = vpop.f32.mrf.mxu2  ;;  %v817_v21 = vpop.f32.mrf.mxu3 }
 0x2b4   :  { %v777_v22 = vadd.f32 %v776_v20, %v716_v62  ;;  %v818_v23 = vadd.f32 %v817_v21, %v717_v63 }
 0x2b6   :  { %836 = vst [vmem:[#allocation5 + $0x50] sm:$0xff] %v777_v22 }
 0x2b7   :  { %837 = vst [vmem:[#allocation5 + $0x58] sm:$0xff] %v818_v23 }
 0x2bb   :  { %v779_v24 = vpop.f32.mrf.mxu2  ;;  %v820_v26 = vpop.f32.mrf.mxu3 }
 0x2bc   :  { %v780_v27 = vadd.f32 %v779_v24, %v716_v62  ;;  %v821_v28 = vadd.f32 %v820_v26, %v717_v63 }
 0x2be   :  { %838 = vst [vmem:[#allocation5 + $0x60] sm:$0xff] %v780_v27 }
 0x2bf   :  { %839 = vst [vmem:[#allocation5 + $0x68] sm:$0xff] %v821_v28 }
 0x2c3   :  { %v782_v29 = vpop.f32.mrf.mxu2  ;;  %v823_v30 = vpop.f32.mrf.mxu3 }
 0x2c4   :  { %v783_v31 = vadd.f32 %v782_v29, %v716_v62  ;;  %v824_v19 = vadd.f32 %v823_v30, %v717_v63 }
 0x2c6   :  { %840 = vst [vmem:[#allocation5 + $0x70] sm:$0xff] %v783_v31 }
 0x2c7   :  { %841 = vst [vmem:[#allocation5 + $0x78] sm:$0xff] %v824_v19 }
 0x2c8   :  { %854 = dma.vmem_to_hbm [thread:$0]  %s847_s12, 2048, %s849_s15, [#allocation4], %s1039_s23, %s1039_s23, %s1040_s24  }
 0x2c9   :  { %1036 = dma.done.wait [#allocation4], 2048  }
 0x2ca   :  { %1037 = vsyncadd [#allocation4], 4294965248 }
 0x2cb   :  { %859 = vsyncpa [#allocation3], 1 }
 0x2cc   :  { %860 = vsyncpa [#allocation4], 1 }

</bundles_post_ra>
